<compile_context>
chip_gen: v7x
topology: tpu7x:2x2x1
jax: 0.10.0
libtpu: 0.0.40
codegen_flags: <defaults>
</compile_context>

<pallas_src>
import functools

import jax
import jax.numpy as jnp
from jax import lax
from jax.experimental import pallas as pl
from jax.experimental.pallas import tpu as pltpu

NEG_SLOPE = 0.01   # nn.LeakyReLU default
BN_EPS = 1e-5      # nn.BatchNorm1d default
CONV_PAD = 2       # Conv1d(..., padding=2) hardcoded in the PyTorch module
OUT_PAD = 128      # lane-dense padded output width for the final Linear
MAX_BLOCK_B = 256  # cap on the batch tile (rows per grid step)
GX_REG_LIMIT = 32  # keep gx in registers up to this batch tile


# ----------------------------------------------------------------------------
# Fused kernel: conv(+folded BN)+LeakyReLU -> x@Wih -> LSTM -> sum_T -> Linear
# ----------------------------------------------------------------------------
def sscl_fused_kernel(x_ref, convw_ref, convshift_ref, wih_ref, whh_ref,
                      lstmb_ref, outw_ref, outb_ref, o_ref, *scratch,
                      ksize, t_out, hidden, gx_in_regs):
    # x_ref:        (T+2*pad, Bblk, E)   bf16, time-major
    # convw_ref:    (K*E, C)             bf16, BN scale folded in (im2col weights)
    # convshift_ref:(1, C)               f32, folded conv bias + BN shift
    # wih_ref:      (C, 4H) bf16   whh_ref: (H, 4H) bf16   lstmb_ref: (1, 4H) f32
    # outw_ref:     (H, OUT_PAD) bf16    outb_ref: (1, OUT_PAD) f32
    # o_ref:        (Bblk, OUT_PAD) f32
    # scratch:      () if gx_in_regs else (gx_sc,) with gx_sc (T_out,Bblk,4H) bf16
    bblk = x_ref.shape[1]
    e_dim = x_ref.shape[2]
    h_dim = hidden

    # ---- Conv1d (stride 1) + folded BatchNorm + LeakyReLU -------------------
    # One im2col matmul: K shifted (T_out*Bblk, E) views concatenated along the
    # contraction axis -> a single MXU dot with a K*E-deep contraction.
    cols = [x_ref[k:k + t_out].reshape(t_out * bblk, e_dim) for k in range(ksize)]
    im2col = jnp.concatenate(cols, axis=-1)            # (T_out*Bblk, K*E) bf16
    acc = jnp.dot(im2col, convw_ref[...],
                  preferred_element_type=jnp.float32)  # (T_out*Bblk, C) f32
    acc = acc + convshift_ref[...]                     # folded conv bias + BN shift
    act = jnp.maximum(acc, NEG_SLOPE * acc)            # LeakyReLU
    # nn.Dropout is identity in eval mode; no stochastic path here.

    # ---- input projection hoisted out of the recurrence ---------------------
    gx = jnp.dot(act.astype(jnp.bfloat16), wih_ref[...],
                 preferred_element_type=jnp.float32) + lstmb_ref[...]
    if not gx_in_regs:
        gx_sc = scratch[0]
        gx_sc[...] = gx.reshape(t_out, bblk, 4 * h_dim).astype(jnp.bfloat16)

    # ---- LSTM recurrence: only h @ Whh (single bf16 MXU pass) is serial -----
    whh = whh_ref[...]                                 # hoisted loop-invariant read
    h = jnp.zeros((bblk, h_dim), jnp.float32)
    c = jnp.zeros((bblk, h_dim), jnp.float32)
    h_sum = jnp.zeros((bblk, h_dim), jnp.float32)
    for t in range(t_out):                             # static unroll (short fixed T)
        if gx_in_regs:
            gx_t = gx[t * bblk:(t + 1) * bblk]         # sublane-aligned static slice
        else:
            gx_t = gx_sc[t].astype(jnp.float32)
        gates = gx_t + jnp.dot(h.astype(jnp.bfloat16), whh,
                               preferred_element_type=jnp.float32)
        # Gate columns were permuted in the wrapper to [i, f, o, g]:
        sg = jax.nn.sigmoid(gates[:, :3 * h_dim])      # i, f, o in one EUP pass
        i_g = sg[:, 0:h_dim]
        f_g = sg[:, h_dim:2 * h_dim]
        o_g = sg[:, 2 * h_dim:3 * h_dim]
        g_g = jnp.tanh(gates[:, 3 * h_dim:4 * h_dim])
        c = f_g * c + i_g * g_g                        # f32 elementwise (v5e-safe)
        h = o_g * jnp.tanh(c)
        h_sum = h_sum + h                              # fused sum over time

    # ---- final Linear, lane-dense padded output ------------------------------
    o_ref[...] = (jnp.dot(h_sum.astype(jnp.bfloat16), outw_ref[...],
                          preferred_element_type=jnp.float32) + outb_ref[...])


# ----------------------------------------------------------------------------
# Wrapper
# ----------------------------------------------------------------------------
def _choose_block_b(batch):
    """Pick a sublane-aligned batch tile; >=2 tiles when B_pad >= 16 (v7x)."""
    b8 = ((batch + 7) // 8) * 8
    if b8 <= 8:
        return 8, 8
    half = ((b8 + 15) // 16) * 8            # ~half the batch, rounded up to 8
    block = min(MAX_BLOCK_B, half)
    b_pad = ((b8 + block - 1) // block) * block
    return block, b_pad


def _permute_gates(w, hidden):
    """Reorder gate columns from PyTorch [i, f, g, o] to kernel [i, f, o, g]."""
    return jnp.concatenate(
        [w[..., 0:hidden], w[..., hidden:2 * hidden],
         w[..., 3 * hidden:4 * hidden], w[..., 2 * hidden:3 * hidden]], axis=-1)


def sscl_forward(tokens, params):
    B, T = tokens.shape
    E = params['embedding'].shape[1]
    K, _, C = params['conv_w'].shape
    H = params['lstm_whh'].shape[0]
    OUT = params['out_w'].shape[1]
    T_out = T + 2 * CONV_PAD - K + 1

    # Embedding gather directly into time-major bf16 layout, then pad.
    block_b, b_pad = _choose_block_b(B)
    emb_table = params['embedding'].astype(jnp.bfloat16)
    x = jnp.take(emb_table, tokens.T, axis=0)                   # (T, B, E) bf16
    x = jnp.pad(x, ((CONV_PAD, CONV_PAD), (0, b_pad - B), (0, 0)))

    # Fold eval-mode BatchNorm into the conv weights / bias; im2col weight layout.
    bn_scale = params['bn_gamma'] * lax.rsqrt(params['bn_var'] + BN_EPS)   # (1,C)
    conv_w = (params['conv_w'] * bn_scale).reshape(K * E, C).astype(jnp.bfloat16)
    conv_shift = ((params['conv_b'] - params['bn_mean']) * bn_scale
                  + params['bn_beta'])                                      # (1,C) f32

    # LSTM weights: gate columns permuted to [i, f, o, g]; bf16 MXU operands.
    wih = _permute_gates(params['lstm_wih'], H).astype(jnp.bfloat16)   # (C, 4H)
    whh = _permute_gates(params['lstm_whh'], H).astype(jnp.bfloat16)   # (H, 4H)
    lstm_b = _permute_gates(params['lstm_b'], H)                        # (1, 4H) f32

    # Lane-dense padded output weights for the final Linear (bf16 operand).
    out_w_p = jnp.pad(params['out_w'], ((0, 0), (0, OUT_PAD - OUT))).astype(jnp.bfloat16)
    out_b_p = jnp.pad(params['out_b'], ((0, 0), (0, OUT_PAD - OUT)))

    gx_in_regs = block_b <= GX_REG_LIMIT
    scratch_shapes = [] if gx_in_regs else [
        pltpu.VMEM((T_out, block_b, 4 * H), jnp.bfloat16)]

    grid = (b_pad // block_b,)
    t_pad_len = T + 2 * CONV_PAD

    out_padded = pl.pallas_call(
        functools.partial(sscl_fused_kernel, ksize=K, t_out=T_out, hidden=H,
                          gx_in_regs=gx_in_regs),
        out_shape=jax.ShapeDtypeStruct((b_pad, OUT_PAD), jnp.float32),
        grid=grid,
        in_specs=[
            pl.BlockSpec((t_pad_len, block_b, E), lambda b: (0, b, 0)),
            pl.BlockSpec(conv_w.shape, lambda b: (0, 0)),
            pl.BlockSpec(conv_shift.shape, lambda b: (0, 0)),
            pl.BlockSpec(wih.shape, lambda b: (0, 0)),
            pl.BlockSpec(whh.shape, lambda b: (0, 0)),
            pl.BlockSpec(lstm_b.shape, lambda b: (0, 0)),
            pl.BlockSpec(out_w_p.shape, lambda b: (0, 0)),
            pl.BlockSpec(out_b_p.shape, lambda b: (0, 0)),
        ],
        out_specs=pl.BlockSpec((block_b, OUT_PAD), lambda b: (b, 0)),
        scratch_shapes=scratch_shapes,
        compiler_params=pltpu.CompilerParams(
            dimension_semantics=("parallel",)),   # batch tiles -> megacore split
    )(x, conv_w, conv_shift, wih, whh, lstm_b, out_w_p, out_b_p)

    return out_padded[:B, :OUT]


# ----------------------------------------------------------------------------
# Deterministic parameter construction (shapes from SSCL.__init__)
# ----------------------------------------------------------------------------
def make_params(key, vocab, emb_dim, cnn_dim, ksize, hidden, out_dim):
    ks = jax.random.split(key, 10)
    embedding = 0.1 * jax.random.normal(ks[0], (vocab, emb_dim), jnp.float32)
    embedding = embedding.at[0].set(0.0)       # padding_idx = Constants.PAD = 0

    conv_w_torch = 0.1 * jax.random.normal(ks[1], (cnn_dim, emb_dim, ksize),
                                           jnp.float32)   # (C_out, C_in, K)
    conv_w = jnp.transpose(conv_w_torch, (2, 1, 0))        # (K, E, C)
    conv_b = 0.1 * jax.random.normal(ks[2], (1, cnn_dim), jnp.float32)

    bn_gamma = jnp.ones((1, cnn_dim), jnp.float32)
    bn_beta = jnp.zeros((1, cnn_dim), jnp.float32)
    bn_mean = jnp.zeros((1, cnn_dim), jnp.float32)
    bn_var = jnp.ones((1, cnn_dim), jnp.float32)

    wih_torch = 0.1 * jax.random.normal(ks[3], (4 * hidden, cnn_dim), jnp.float32)
    whh_torch = 0.1 * jax.random.normal(ks[4], (4 * hidden, hidden), jnp.float32)
    b_ih = 0.1 * jax.random.normal(ks[5], (4 * hidden,), jnp.float32)
    b_hh = 0.1 * jax.random.normal(ks[6], (4 * hidden,), jnp.float32)

    out_w_torch = 0.1 * jax.random.normal(ks[7], (out_dim, hidden), jnp.float32)
    out_b = 0.1 * jax.random.normal(ks[8], (1, out_dim), jnp.float32)

    return dict(
        embedding=embedding,
        conv_w=conv_w, conv_b=conv_b,
        bn_gamma=bn_gamma, bn_beta=bn_beta, bn_mean=bn_mean, bn_var=bn_var,
        lstm_wih=wih_torch.T, lstm_whh=whh_torch.T,
        lstm_b=(b_ih + b_hh).reshape(1, -1),
        out_w=out_w_torch.T, out_b=out_b,
    )


if __name__ == "__main__":
    # Small config consistent with the module's forward:
    # args.vocab_size=50, SSCL_embedingDim=32, SSCL_CNNDim=32, SSCL_CNNKernel=5,
    # SSCL_RNNHidden=32, SSCL_LSTMLayers=1, textModel_outDim=8; batch=2, seq=8.
    B, T, VOCAB = 2, 8, 50
    E, C, K, H, OUT = 32, 32, 5, 32, 8

    key = jax.random.PRNGKey(0)
    k_tok, k_par = jax.random.split(key)
    tokens = jax.random.randint(k_tok, (B, T), 0, VOCAB, dtype=jnp.int32)
    params = make_params(k_par, VOCAB, E, C, K, H, OUT)

    forward = jax.jit(sscl_forward)
    out = forward(tokens, params)
    out = jax.block_until_ready(out)
    assert out.shape == (B, OUT), out.shape
    print("KERNEL_OK")
</pallas_src>

<mosaic_0001>
module attributes {stable_mosaic.version = 11 : i64} {
  func.func @sscl_fused_kernel(%arg0: i32, %arg1: memref<12x8x32xbf16, #tpu.memory_space<vmem>>, %arg2: memref<160x32xbf16, #tpu.memory_space<vmem>>, %arg3: memref<1x32xf32, #tpu.memory_space<vmem>>, %arg4: memref<32x128xbf16, #tpu.memory_space<vmem>>, %arg5: memref<32x128xbf16, #tpu.memory_space<vmem>>, %arg6: memref<1x128xf32, #tpu.memory_space<vmem>>, %arg7: memref<32x128xbf16, #tpu.memory_space<vmem>>, %arg8: memref<1x128xf32, #tpu.memory_space<vmem>>, %arg9: memref<8x128xf32, #tpu.memory_space<vmem>>) attributes {dimension_semantics = [#tpu.dimension_semantics<parallel>], iteration_bounds = array<i64: 1>, scalar_prefetch = 0 : i64, scratch_operands = 0 : i64, tpu.core_type = #tpu.core_type<tc>, window_params = [{transform_indices = @transform_0, window_bounds = array<i64: 12, 8, 32>}, {pipeline_mode = #tpu.pipeline_mode<synchronous>, transform_indices = @transform_1, window_bounds = array<i64: 160, 32>}, {pipeline_mode = #tpu.pipeline_mode<synchronous>, transform_indices = @transform_2, window_bounds = array<i64: 1, 32>}, {pipeline_mode = #tpu.pipeline_mode<synchronous>, transform_indices = @transform_3, window_bounds = array<i64: 32, 128>}, {pipeline_mode = #tpu.pipeline_mode<synchronous>, transform_indices = @transform_4, window_bounds = array<i64: 32, 128>}, {pipeline_mode = #tpu.pipeline_mode<synchronous>, transform_indices = @transform_5, window_bounds = array<i64: 1, 128>}, {pipeline_mode = #tpu.pipeline_mode<synchronous>, transform_indices = @transform_6, window_bounds = array<i64: 32, 128>}, {pipeline_mode = #tpu.pipeline_mode<synchronous>, transform_indices = @transform_7, window_bounds = array<i64: 1, 128>}, {transform_indices = @transform_8, window_bounds = array<i64: 8, 128>}]} {
    %c0 = arith.constant 0 : index
    %c0_0 = arith.constant 0 : index
    %c0_1 = arith.constant 0 : index
    %0 = vector.load %arg1[%c0, %c0_0, %c0_1] : memref<12x8x32xbf16, #tpu.memory_space<vmem>>, vector<8x8x32xbf16>
    %1 = vector.shape_cast %0 : vector<8x8x32xbf16> to vector<64x32xbf16>
    %c1 = arith.constant 1 : index
    %c0_2 = arith.constant 0 : index
    %c0_3 = arith.constant 0 : index
    %2 = vector.load %arg1[%c1, %c0_2, %c0_3] : memref<12x8x32xbf16, #tpu.memory_space<vmem>>, vector<8x8x32xbf16>
    %3 = vector.shape_cast %2 : vector<8x8x32xbf16> to vector<64x32xbf16>
    %c2 = arith.constant 2 : index
    %c0_4 = arith.constant 0 : index
    %c0_5 = arith.constant 0 : index
    %4 = vector.load %arg1[%c2, %c0_4, %c0_5] : memref<12x8x32xbf16, #tpu.memory_space<vmem>>, vector<8x8x32xbf16>
    %5 = vector.shape_cast %4 : vector<8x8x32xbf16> to vector<64x32xbf16>
    %c3 = arith.constant 3 : index
    %c0_6 = arith.constant 0 : index
    %c0_7 = arith.constant 0 : index
    %6 = vector.load %arg1[%c3, %c0_6, %c0_7] : memref<12x8x32xbf16, #tpu.memory_space<vmem>>, vector<8x8x32xbf16>
    %7 = vector.shape_cast %6 : vector<8x8x32xbf16> to vector<64x32xbf16>
    %c4 = arith.constant 4 : index
    %c0_8 = arith.constant 0 : index
    %c0_9 = arith.constant 0 : index
    %8 = vector.load %arg1[%c4, %c0_8, %c0_9] : memref<12x8x32xbf16, #tpu.memory_space<vmem>>, vector<8x8x32xbf16>
    %9 = vector.shape_cast %8 : vector<8x8x32xbf16> to vector<64x32xbf16>
    %10 = tpu.concatenate %1, %3, %5, %7, %9 in 1 : vector<64x32xbf16>, vector<64x32xbf16>, vector<64x32xbf16>, vector<64x32xbf16>, vector<64x32xbf16> -> vector<64x160xbf16>
    %c0_10 = arith.constant 0 : index
    %c0_11 = arith.constant 0 : index
    %11 = vector.load %arg2[%c0_10, %c0_11] : memref<160x32xbf16, #tpu.memory_space<vmem>>, vector<160x32xbf16>
    %cst = arith.constant dense<0.000000e+00> : vector<64x32xf32>
    %12 = tpu.matmul %10, %11, %cst {dimension_numbers = #tpu.dot_dimension_numbers<[1], [0], [0], [1], [0, 0, 1, 1], [], []>} : vector<64x160xbf16>, vector<160x32xbf16>, vector<64x32xf32> -> vector<64x32xf32>
    %c0_12 = arith.constant 0 : index
    %c0_13 = arith.constant 0 : index
    %13 = vector.load %arg3[%c0_12, %c0_13] : memref<1x32xf32, #tpu.memory_space<vmem>>, vector<1x32xf32>
    %14 = vector.broadcast %13 : vector<1x32xf32> to vector<64x32xf32>
    %15 = arith.addf %12, %14 : vector<64x32xf32>
    %cst_14 = arith.constant 0.00999999977 : f32
    %16 = vector.broadcast %cst_14 : f32 to vector<64x32xf32>
    %17 = arith.mulf %16, %15 : vector<64x32xf32>
    %18 = arith.maximumf %15, %17 : vector<64x32xf32>
    %19 = arith.truncf %18 : vector<64x32xf32> to vector<64x32xbf16>
    %c0_15 = arith.constant 0 : index
    %c0_16 = arith.constant 0 : index
    %20 = vector.load %arg4[%c0_15, %c0_16] : memref<32x128xbf16, #tpu.memory_space<vmem>>, vector<32x128xbf16>
    %cst_17 = arith.constant dense<0.000000e+00> : vector<64x128xf32>
    %21 = tpu.matmul %19, %20, %cst_17 {dimension_numbers = #tpu.dot_dimension_numbers<[1], [0], [0], [1], [0, 0, 1, 1], [], []>} : vector<64x32xbf16>, vector<32x128xbf16>, vector<64x128xf32> -> vector<64x128xf32>
    %c0_18 = arith.constant 0 : index
    %c0_19 = arith.constant 0 : index
    %22 = vector.load %arg6[%c0_18, %c0_19] : memref<1x128xf32, #tpu.memory_space<vmem>>, vector<1x128xf32>
    %23 = vector.broadcast %22 : vector<1x128xf32> to vector<64x128xf32>
    %24 = arith.addf %21, %23 : vector<64x128xf32>
    %c0_20 = arith.constant 0 : index
    %c0_21 = arith.constant 0 : index
    %25 = vector.load %arg5[%c0_20, %c0_21] : memref<32x128xbf16, #tpu.memory_space<vmem>>, vector<32x128xbf16>
    %cst_22 = arith.constant 0.000000e+00 : f32
    %26 = vector.broadcast %cst_22 : f32 to vector<8x32xf32>
    %cst_23 = arith.constant 0.000000e+00 : f32
    %27 = vector.broadcast %cst_23 : f32 to vector<8x32xf32>
    %cst_24 = arith.constant 0.000000e+00 : f32
    %28 = vector.broadcast %cst_24 : f32 to vector<8x32xf32>
    %29 = vector.extract_strided_slice %24 {offsets = [0, 0], sizes = [8, 128], strides = [1, 1]} : vector<64x128xf32> to vector<8x128xf32>
    %30 = arith.truncf %26 : vector<8x32xf32> to vector<8x32xbf16>
    %cst_25 = arith.constant dense<0.000000e+00> : vector<8x128xf32>
    %31 = tpu.matmul %30, %25, %cst_25 {dimension_numbers = #tpu.dot_dimension_numbers<[1], [0], [0], [1], [0, 0, 1, 1], [], []>} : vector<8x32xbf16>, vector<32x128xbf16>, vector<8x128xf32> -> vector<8x128xf32>
    %32 = arith.addf %29, %31 : vector<8x128xf32>
    %33 = vector.extract_strided_slice %32 {offsets = [0, 0], sizes = [8, 96], strides = [1, 1]} : vector<8x128xf32> to vector<8x96xf32>
    %34 = arith.negf %33 : vector<8x96xf32>
    %35 = math.exp %34 : vector<8x96xf32>
    %cst_26 = arith.constant 1.000000e+00 : f32
    %36 = vector.broadcast %cst_26 : f32 to vector<8x96xf32>
    %37 = arith.addf %36, %35 : vector<8x96xf32>
    %38 = arith.divf %36, %37 : vector<8x96xf32>
    %39 = vector.extract_strided_slice %38 {offsets = [0, 0], sizes = [8, 32], strides = [1, 1]} : vector<8x96xf32> to vector<8x32xf32>
    %40 = vector.extract_strided_slice %38 {offsets = [0, 32], sizes = [8, 32], strides = [1, 1]} : vector<8x96xf32> to vector<8x32xf32>
    %41 = vector.extract_strided_slice %38 {offsets = [0, 64], sizes = [8, 32], strides = [1, 1]} : vector<8x96xf32> to vector<8x32xf32>
    %42 = vector.extract_strided_slice %32 {offsets = [0, 96], sizes = [8, 32], strides = [1, 1]} : vector<8x128xf32> to vector<8x32xf32>
    %43 = math.tanh %42 : vector<8x32xf32>
    %44 = arith.mulf %40, %27 : vector<8x32xf32>
    %45 = arith.mulf %39, %43 : vector<8x32xf32>
    %46 = arith.addf %44, %45 : vector<8x32xf32>
    %47 = math.tanh %46 : vector<8x32xf32>
    %48 = arith.mulf %41, %47 : vector<8x32xf32>
    %49 = arith.addf %28, %48 : vector<8x32xf32>
    %50 = vector.extract_strided_slice %24 {offsets = [8, 0], sizes = [8, 128], strides = [1, 1]} : vector<64x128xf32> to vector<8x128xf32>
    %51 = arith.truncf %48 : vector<8x32xf32> to vector<8x32xbf16>
    %cst_27 = arith.constant dense<0.000000e+00> : vector<8x128xf32>
    %52 = tpu.matmul %51, %25, %cst_27 {dimension_numbers = #tpu.dot_dimension_numbers<[1], [0], [0], [1], [0, 0, 1, 1], [], []>} : vector<8x32xbf16>, vector<32x128xbf16>, vector<8x128xf32> -> vector<8x128xf32>
    %53 = arith.addf %50, %52 : vector<8x128xf32>
    %54 = vector.extract_strided_slice %53 {offsets = [0, 0], sizes = [8, 96], strides = [1, 1]} : vector<8x128xf32> to vector<8x96xf32>
    %55 = arith.negf %54 : vector<8x96xf32>
    %56 = math.exp %55 : vector<8x96xf32>
    %cst_28 = arith.constant 1.000000e+00 : f32
    %57 = vector.broadcast %cst_28 : f32 to vector<8x96xf32>
    %58 = arith.addf %57, %56 : vector<8x96xf32>
    %59 = arith.divf %57, %58 : vector<8x96xf32>
    %60 = vector.extract_strided_slice %59 {offsets = [0, 0], sizes = [8, 32], strides = [1, 1]} : vector<8x96xf32> to vector<8x32xf32>
    %61 = vector.extract_strided_slice %59 {offsets = [0, 32], sizes = [8, 32], strides = [1, 1]} : vector<8x96xf32> to vector<8x32xf32>
    %62 = vector.extract_strided_slice %59 {offsets = [0, 64], sizes = [8, 32], strides = [1, 1]} : vector<8x96xf32> to vector<8x32xf32>
    %63 = vector.extract_strided_slice %53 {offsets = [0, 96], sizes = [8, 32], strides = [1, 1]} : vector<8x128xf32> to vector<8x32xf32>
    %64 = math.tanh %63 : vector<8x32xf32>
    %65 = arith.mulf %61, %46 : vector<8x32xf32>
    %66 = arith.mulf %60, %64 : vector<8x32xf32>
    %67 = arith.addf %65, %66 : vector<8x32xf32>
    %68 = math.tanh %67 : vector<8x32xf32>
    %69 = arith.mulf %62, %68 : vector<8x32xf32>
    %70 = arith.addf %49, %69 : vector<8x32xf32>
    %71 = vector.extract_strided_slice %24 {offsets = [16, 0], sizes = [8, 128], strides = [1, 1]} : vector<64x128xf32> to vector<8x128xf32>
    %72 = arith.truncf %69 : vector<8x32xf32> to vector<8x32xbf16>
    %cst_29 = arith.constant dense<0.000000e+00> : vector<8x128xf32>
    %73 = tpu.matmul %72, %25, %cst_29 {dimension_numbers = #tpu.dot_dimension_numbers<[1], [0], [0], [1], [0, 0, 1, 1], [], []>} : vector<8x32xbf16>, vector<32x128xbf16>, vector<8x128xf32> -> vector<8x128xf32>
    %74 = arith.addf %71, %73 : vector<8x128xf32>
    %75 = vector.extract_strided_slice %74 {offsets = [0, 0], sizes = [8, 96], strides = [1, 1]} : vector<8x128xf32> to vector<8x96xf32>
    %76 = arith.negf %75 : vector<8x96xf32>
    %77 = math.exp %76 : vector<8x96xf32>
    %cst_30 = arith.constant 1.000000e+00 : f32
    %78 = vector.broadcast %cst_30 : f32 to vector<8x96xf32>
    %79 = arith.addf %78, %77 : vector<8x96xf32>
    %80 = arith.divf %78, %79 : vector<8x96xf32>
    %81 = vector.extract_strided_slice %80 {offsets = [0, 0], sizes = [8, 32], strides = [1, 1]} : vector<8x96xf32> to vector<8x32xf32>
    %82 = vector.extract_strided_slice %80 {offsets = [0, 32], sizes = [8, 32], strides = [1, 1]} : vector<8x96xf32> to vector<8x32xf32>
    %83 = vector.extract_strided_slice %80 {offsets = [0, 64], sizes = [8, 32], strides = [1, 1]} : vector<8x96xf32> to vector<8x32xf32>
    %84 = vector.extract_strided_slice %74 {offsets = [0, 96], sizes = [8, 32], strides = [1, 1]} : vector<8x128xf32> to vector<8x32xf32>
    %85 = math.tanh %84 : vector<8x32xf32>
    %86 = arith.mulf %82, %67 : vector<8x32xf32>
    %87 = arith.mulf %81, %85 : vector<8x32xf32>
    %88 = arith.addf %86, %87 : vector<8x32xf32>
    %89 = math.tanh %88 : vector<8x32xf32>
    %90 = arith.mulf %83, %89 : vector<8x32xf32>
    %91 = arith.addf %70, %90 : vector<8x32xf32>
    %92 = vector.extract_strided_slice %24 {offsets = [24, 0], sizes = [8, 128], strides = [1, 1]} : vector<64x128xf32> to vector<8x128xf32>
    %93 = arith.truncf %90 : vector<8x32xf32> to vector<8x32xbf16>
    %cst_31 = arith.constant dense<0.000000e+00> : vector<8x128xf32>
    %94 = tpu.matmul %93, %25, %cst_31 {dimension_numbers = #tpu.dot_dimension_numbers<[1], [0], [0], [1], [0, 0, 1, 1], [], []>} : vector<8x32xbf16>, vector<32x128xbf16>, vector<8x128xf32> -> vector<8x128xf32>
    %95 = arith.addf %92, %94 : vector<8x128xf32>
    %96 = vector.extract_strided_slice %95 {offsets = [0, 0], sizes = [8, 96], strides = [1, 1]} : vector<8x128xf32> to vector<8x96xf32>
    %97 = arith.negf %96 : vector<8x96xf32>
    %98 = math.exp %97 : vector<8x96xf32>
    %cst_32 = arith.constant 1.000000e+00 : f32
    %99 = vector.broadcast %cst_32 : f32 to vector<8x96xf32>
    %100 = arith.addf %99, %98 : vector<8x96xf32>
    %101 = arith.divf %99, %100 : vector<8x96xf32>
    %102 = vector.extract_strided_slice %101 {offsets = [0, 0], sizes = [8, 32], strides = [1, 1]} : vector<8x96xf32> to vector<8x32xf32>
    %103 = vector.extract_strided_slice %101 {offsets = [0, 32], sizes = [8, 32], strides = [1, 1]} : vector<8x96xf32> to vector<8x32xf32>
    %104 = vector.extract_strided_slice %101 {offsets = [0, 64], sizes = [8, 32], strides = [1, 1]} : vector<8x96xf32> to vector<8x32xf32>
    %105 = vector.extract_strided_slice %95 {offsets = [0, 96], sizes = [8, 32], strides = [1, 1]} : vector<8x128xf32> to vector<8x32xf32>
    %106 = math.tanh %105 : vector<8x32xf32>
    %107 = arith.mulf %103, %88 : vector<8x32xf32>
    %108 = arith.mulf %102, %106 : vector<8x32xf32>
    %109 = arith.addf %107, %108 : vector<8x32xf32>
    %110 = math.tanh %109 : vector<8x32xf32>
    %111 = arith.mulf %104, %110 : vector<8x32xf32>
    %112 = arith.addf %91, %111 : vector<8x32xf32>
    %113 = vector.extract_strided_slice %24 {offsets = [32, 0], sizes = [8, 128], strides = [1, 1]} : vector<64x128xf32> to vector<8x128xf32>
    %114 = arith.truncf %111 : vector<8x32xf32> to vector<8x32xbf16>
    %cst_33 = arith.constant dense<0.000000e+00> : vector<8x128xf32>
    %115 = tpu.matmul %114, %25, %cst_33 {dimension_numbers = #tpu.dot_dimension_numbers<[1], [0], [0], [1], [0, 0, 1, 1], [], []>} : vector<8x32xbf16>, vector<32x128xbf16>, vector<8x128xf32> -> vector<8x128xf32>
    %116 = arith.addf %113, %115 : vector<8x128xf32>
    %117 = vector.extract_strided_slice %116 {offsets = [0, 0], sizes = [8, 96], strides = [1, 1]} : vector<8x128xf32> to vector<8x96xf32>
    %118 = arith.negf %117 : vector<8x96xf32>
    %119 = math.exp %118 : vector<8x96xf32>
    %cst_34 = arith.constant 1.000000e+00 : f32
    %120 = vector.broadcast %cst_34 : f32 to vector<8x96xf32>
    %121 = arith.addf %120, %119 : vector<8x96xf32>
    %122 = arith.divf %120, %121 : vector<8x96xf32>
    %123 = vector.extract_strided_slice %122 {offsets = [0, 0], sizes = [8, 32], strides = [1, 1]} : vector<8x96xf32> to vector<8x32xf32>
    %124 = vector.extract_strided_slice %122 {offsets = [0, 32], sizes = [8, 32], strides = [1, 1]} : vector<8x96xf32> to vector<8x32xf32>
    %125 = vector.extract_strided_slice %122 {offsets = [0, 64], sizes = [8, 32], strides = [1, 1]} : vector<8x96xf32> to vector<8x32xf32>
    %126 = vector.extract_strided_slice %116 {offsets = [0, 96], sizes = [8, 32], strides = [1, 1]} : vector<8x128xf32> to vector<8x32xf32>
    %127 = math.tanh %126 : vector<8x32xf32>
    %128 = arith.mulf %124, %109 : vector<8x32xf32>
    %129 = arith.mulf %123, %127 : vector<8x32xf32>
    %130 = arith.addf %128, %129 : vector<8x32xf32>
    %131 = math.tanh %130 : vector<8x32xf32>
    %132 = arith.mulf %125, %131 : vector<8x32xf32>
    %133 = arith.addf %112, %132 : vector<8x32xf32>
    %134 = vector.extract_strided_slice %24 {offsets = [40, 0], sizes = [8, 128], strides = [1, 1]} : vector<64x128xf32> to vector<8x128xf32>
    %135 = arith.truncf %132 : vector<8x32xf32> to vector<8x32xbf16>
    %cst_35 = arith.constant dense<0.000000e+00> : vector<8x128xf32>
    %136 = tpu.matmul %135, %25, %cst_35 {dimension_numbers = #tpu.dot_dimension_numbers<[1], [0], [0], [1], [0, 0, 1, 1], [], []>} : vector<8x32xbf16>, vector<32x128xbf16>, vector<8x128xf32> -> vector<8x128xf32>
    %137 = arith.addf %134, %136 : vector<8x128xf32>
    %138 = vector.extract_strided_slice %137 {offsets = [0, 0], sizes = [8, 96], strides = [1, 1]} : vector<8x128xf32> to vector<8x96xf32>
    %139 = arith.negf %138 : vector<8x96xf32>
    %140 = math.exp %139 : vector<8x96xf32>
    %cst_36 = arith.constant 1.000000e+00 : f32
    %141 = vector.broadcast %cst_36 : f32 to vector<8x96xf32>
    %142 = arith.addf %141, %140 : vector<8x96xf32>
    %143 = arith.divf %141, %142 : vector<8x96xf32>
    %144 = vector.extract_strided_slice %143 {offsets = [0, 0], sizes = [8, 32], strides = [1, 1]} : vector<8x96xf32> to vector<8x32xf32>
    %145 = vector.extract_strided_slice %143 {offsets = [0, 32], sizes = [8, 32], strides = [1, 1]} : vector<8x96xf32> to vector<8x32xf32>
    %146 = vector.extract_strided_slice %143 {offsets = [0, 64], sizes = [8, 32], strides = [1, 1]} : vector<8x96xf32> to vector<8x32xf32>
    %147 = vector.extract_strided_slice %137 {offsets = [0, 96], sizes = [8, 32], strides = [1, 1]} : vector<8x128xf32> to vector<8x32xf32>
    %148 = math.tanh %147 : vector<8x32xf32>
    %149 = arith.mulf %145, %130 : vector<8x32xf32>
    %150 = arith.mulf %144, %148 : vector<8x32xf32>
    %151 = arith.addf %149, %150 : vector<8x32xf32>
    %152 = math.tanh %151 : vector<8x32xf32>
    %153 = arith.mulf %146, %152 : vector<8x32xf32>
    %154 = arith.addf %133, %153 : vector<8x32xf32>
    %155 = vector.extract_strided_slice %24 {offsets = [48, 0], sizes = [8, 128], strides = [1, 1]} : vector<64x128xf32> to vector<8x128xf32>
    %156 = arith.truncf %153 : vector<8x32xf32> to vector<8x32xbf16>
    %cst_37 = arith.constant dense<0.000000e+00> : vector<8x128xf32>
    %157 = tpu.matmul %156, %25, %cst_37 {dimension_numbers = #tpu.dot_dimension_numbers<[1], [0], [0], [1], [0, 0, 1, 1], [], []>} : vector<8x32xbf16>, vector<32x128xbf16>, vector<8x128xf32> -> vector<8x128xf32>
    %158 = arith.addf %155, %157 : vector<8x128xf32>
    %159 = vector.extract_strided_slice %158 {offsets = [0, 0], sizes = [8, 96], strides = [1, 1]} : vector<8x128xf32> to vector<8x96xf32>
    %160 = arith.negf %159 : vector<8x96xf32>
    %161 = math.exp %160 : vector<8x96xf32>
    %cst_38 = arith.constant 1.000000e+00 : f32
    %162 = vector.broadcast %cst_38 : f32 to vector<8x96xf32>
    %163 = arith.addf %162, %161 : vector<8x96xf32>
    %164 = arith.divf %162, %163 : vector<8x96xf32>
    %165 = vector.extract_strided_slice %164 {offsets = [0, 0], sizes = [8, 32], strides = [1, 1]} : vector<8x96xf32> to vector<8x32xf32>
    %166 = vector.extract_strided_slice %164 {offsets = [0, 32], sizes = [8, 32], strides = [1, 1]} : vector<8x96xf32> to vector<8x32xf32>
    %167 = vector.extract_strided_slice %164 {offsets = [0, 64], sizes = [8, 32], strides = [1, 1]} : vector<8x96xf32> to vector<8x32xf32>
    %168 = vector.extract_strided_slice %158 {offsets = [0, 96], sizes = [8, 32], strides = [1, 1]} : vector<8x128xf32> to vector<8x32xf32>
    %169 = math.tanh %168 : vector<8x32xf32>
    %170 = arith.mulf %166, %151 : vector<8x32xf32>
    %171 = arith.mulf %165, %169 : vector<8x32xf32>
    %172 = arith.addf %170, %171 : vector<8x32xf32>
    %173 = math.tanh %172 : vector<8x32xf32>
    %174 = arith.mulf %167, %173 : vector<8x32xf32>
    %175 = arith.addf %154, %174 : vector<8x32xf32>
    %176 = vector.extract_strided_slice %24 {offsets = [56, 0], sizes = [8, 128], strides = [1, 1]} : vector<64x128xf32> to vector<8x128xf32>
    %177 = arith.truncf %174 : vector<8x32xf32> to vector<8x32xbf16>
    %cst_39 = arith.constant dense<0.000000e+00> : vector<8x128xf32>
    %178 = tpu.matmul %177, %25, %cst_39 {dimension_numbers = #tpu.dot_dimension_numbers<[1], [0], [0], [1], [0, 0, 1, 1], [], []>} : vector<8x32xbf16>, vector<32x128xbf16>, vector<8x128xf32> -> vector<8x128xf32>
    %179 = arith.addf %176, %178 : vector<8x128xf32>
    %180 = vector.extract_strided_slice %179 {offsets = [0, 0], sizes = [8, 96], strides = [1, 1]} : vector<8x128xf32> to vector<8x96xf32>
    %181 = arith.negf %180 : vector<8x96xf32>
    %182 = math.exp %181 : vector<8x96xf32>
    %cst_40 = arith.constant 1.000000e+00 : f32
    %183 = vector.broadcast %cst_40 : f32 to vector<8x96xf32>
    %184 = arith.addf %183, %182 : vector<8x96xf32>
    %185 = arith.divf %183, %184 : vector<8x96xf32>
    %186 = vector.extract_strided_slice %185 {offsets = [0, 0], sizes = [8, 32], strides = [1, 1]} : vector<8x96xf32> to vector<8x32xf32>
    %187 = vector.extract_strided_slice %185 {offsets = [0, 32], sizes = [8, 32], strides = [1, 1]} : vector<8x96xf32> to vector<8x32xf32>
    %188 = vector.extract_strided_slice %185 {offsets = [0, 64], sizes = [8, 32], strides = [1, 1]} : vector<8x96xf32> to vector<8x32xf32>
    %189 = vector.extract_strided_slice %179 {offsets = [0, 96], sizes = [8, 32], strides = [1, 1]} : vector<8x128xf32> to vector<8x32xf32>
    %190 = math.tanh %189 : vector<8x32xf32>
    %191 = arith.mulf %187, %172 : vector<8x32xf32>
    %192 = arith.mulf %186, %190 : vector<8x32xf32>
    %193 = arith.addf %191, %192 : vector<8x32xf32>
    %194 = math.tanh %193 : vector<8x32xf32>
    %195 = arith.mulf %188, %194 : vector<8x32xf32>
    %196 = arith.addf %175, %195 : vector<8x32xf32>
    %197 = arith.truncf %196 : vector<8x32xf32> to vector<8x32xbf16>
    %c0_41 = arith.constant 0 : index
    %c0_42 = arith.constant 0 : index
    %198 = vector.load %arg7[%c0_41, %c0_42] : memref<32x128xbf16, #tpu.memory_space<vmem>>, vector<32x128xbf16>
    %cst_43 = arith.constant dense<0.000000e+00> : vector<8x128xf32>
    %199 = tpu.matmul %197, %198, %cst_43 {dimension_numbers = #tpu.dot_dimension_numbers<[1], [0], [0], [1], [0, 0, 1, 1], [], []>} : vector<8x32xbf16>, vector<32x128xbf16>, vector<8x128xf32> -> vector<8x128xf32>
    %c0_44 = arith.constant 0 : index
    %c0_45 = arith.constant 0 : index
    %200 = vector.load %arg8[%c0_44, %c0_45] : memref<1x128xf32, #tpu.memory_space<vmem>>, vector<1x128xf32>
    %201 = vector.broadcast %200 : vector<1x128xf32> to vector<8x128xf32>
    %202 = arith.addf %199, %201 : vector<8x128xf32>
    %c0_46 = arith.constant 0 : index
    %c0_47 = arith.constant 0 : index
    %203 = vector.load %arg9[%c0_46, %c0_47] : memref<8x128xf32, #tpu.memory_space<vmem>>, vector<8x128xf32>
    tpu.vector_store %arg9[%c0_46, %c0_47], %202 {strides = array<i32>} : memref<8x128xf32, #tpu.memory_space<vmem>>, vector<8x128xf32>,
    return
  }
  func.func @transform_0(%arg0: i32) -> (i32, i32, i32) {
    %c0_i32 = arith.constant 0 : i32
    %c0_i32_0 = arith.constant 0 : i32
    %c0_i32_1 = arith.constant 0 : i32
    return %c0_i32, %arg0, %c0_i32_0 : i32, i32, i32
  }
  func.func @transform_1(%arg0: i32) -> (i32, i32) {
    %c0_i32 = arith.constant 0 : i32
    %c0_i32_0 = arith.constant 0 : i32
    %c0_i32_1 = arith.constant 0 : i32
    return %c0_i32, %c0_i32_0 : i32, i32
  }
  func.func @transform_2(%arg0: i32) -> (i32, i32) {
    %c0_i32 = arith.constant 0 : i32
    %c0_i32_0 = arith.constant 0 : i32
    %c0_i32_1 = arith.constant 0 : i32
    return %c0_i32, %c0_i32_0 : i32, i32
  }
  func.func @transform_3(%arg0: i32) -> (i32, i32) {
    %c0_i32 = arith.constant 0 : i32
    %c0_i32_0 = arith.constant 0 : i32
    %c0_i32_1 = arith.constant 0 : i32
    return %c0_i32, %c0_i32_0 : i32, i32
  }
  func.func @transform_4(%arg0: i32) -> (i32, i32) {
    %c0_i32 = arith.constant 0 : i32
    %c0_i32_0 = arith.constant 0 : i32
    %c0_i32_1 = arith.constant 0 : i32
    return %c0_i32, %c0_i32_0 : i32, i32
  }
  func.func @transform_5(%arg0: i32) -> (i32, i32) {
    %c0_i32 = arith.constant 0 : i32
    %c0_i32_0 = arith.constant 0 : i32
    %c0_i32_1 = arith.constant 0 : i32
    return %c0_i32, %c0_i32_0 : i32, i32
  }
  func.func @transform_6(%arg0: i32) -> (i32, i32) {
    %c0_i32 = arith.constant 0 : i32
    %c0_i32_0 = arith.constant 0 : i32
    %c0_i32_1 = arith.constant 0 : i32
    return %c0_i32, %c0_i32_0 : i32, i32
  }
  func.func @transform_7(%arg0: i32) -> (i32, i32) {
    %c0_i32 = arith.constant 0 : i32
    %c0_i32_0 = arith.constant 0 : i32
    %c0_i32_1 = arith.constant 0 : i32
    return %c0_i32, %c0_i32_0 : i32, i32
  }
  func.func @transform_8(%arg0: i32) -> (i32, i32) {
    %c0_i32 = arith.constant 0 : i32
    %c0_i32_0 = arith.constant 0 : i32
    return %arg0, %c0_i32 : i32, i32
  }
}

</mosaic_0001>

<bundles_post_ra>
// kernel: sscl_forward.1
= control target key start
LH: loop header
LB: loop body
LE: loop exit
PB: predicated region body
PF: predicated region fallthrough
CT: control target
= control target key end

     0   :  { %v1506_v1 = vmov 0   ;;  %s1507_s9 = smov 32   ;;  %s1508_s12 = smov 96   ;;  %vm198_vm0 = vcmask 261120   ;;  %vm211_vm1 = vcmask 523264   ;;  %vm220_vm2 = vcmask 785408   ;;  %s1839_s0 = inlined_call_operand.vmem [shape: bf16[12,8,32], index: 0, kind: input, shape index: {}]   ;;  %s1840_s1 = inlined_call_operand.vmem [shape: bf16[160,32], index: 1, kind: input, shape index: {}]   ;;  %s1841_s3 = inlined_call_operand.vmem [shape: bf16[32,128], index: 3, kind: input, shape index: {}]   ;;  %s1842_s4 = inlined_call_operand.vmem [shape: bf16[32,128], index: 4, kind: input, shape index: {}]   ;;  %s1843_s2 = inlined_call_operand.vmem [shape: f32[1,32], index: 2, kind: input, shape index: {}]   ;;  %s1844_s5 = inlined_call_operand.vmem [shape: f32[1,128], index: 5, kind: input, shape index: {}]   ;;  %s1845_s6 = inlined_call_operand.vmem [shape: bf16[32,128], index: 6, kind: input, shape index: {}]   ;;  %s1846_s7 = inlined_call_operand.vmem [shape: f32[1,128], index: 7, kind: input, shape index: {}]   ;;  %s1847_s8 = inlined_call_operand.vmem [shape: f32[8,128], index: 8, kind: output, shape index: {}]  }
   0x1   :  { %v1406_v0 = vld [vmem:[%s1839_s0 + $0x4] sm:$0xff]   ;;  %332 = vmatprep.subr.bf16.mxu0 %v1506_v1  ;;  %v1407_v2 = vld [vmem:[%s1839_s0 + $0xc] sm:$0xff]   ;;  %s1509_s15 = smov 64   ;;  %v1411_v6 = vld [vmem:[%s1839_s0 + $0x14] sm:$0xff]   ;;  %v1510_v57 = vmov 0.0   ;;  %vm1511_vm3 = vmmov 0  }
   0x2   :  { %114 = vrot.lane.b32.xlu0 %v1406_v0, %s1507_s9  ;;  %v1408_v3 = vld [vmem:[%s1839_s0 + $0x8] sm:$0xff]   ;;  %170 = vrot.lane.b32.xlu1 %v1407_v2, %s1508_s12  ;;  %v1410_v5 = vld [vmem:[%s1839_s0 + $0x10] sm:$0xff]  }
   0x3   :  { %v1409_v4 = vld [vmem:[%s1839_s0 + $0xc] sm:$0xff]   ;;  %v1412_v7 = vld [vmem:[%s1839_s0 + $0x14] sm:$0xff]   ;;  %v1418_v9 = vld [vmem:[%s1840_s1] sm:$0xff]  }
   0x4   :  { %v1413_v8 = vld [vmem:[%s1839_s0 + $0x18] sm:$0xff]   ;;  %333 = vmatpush1.bf16.msra.mxu0 %v1418_v9  ;;  %v1419_v11 = vld [vmem:[%s1840_s1 + $0x8] sm:$0xff]   ;;  %v1416_v13 = vld [vmem:[%s1839_s0 + $0x20] sm:$0xff]  }
   0x5   :  { %v1414_v10 = vld [vmem:[%s1839_s0 + $0x1c] sm:$0xff]   ;;  %334 = vmatprep.subr.bf16.mxu0 %v1506_v1  ;;  %v1420_v14 = vld [vmem:[%s1840_s1 + $0x10] sm:$0xff]   ;;  %v1417_v15 = vld [vmem:[%s1839_s0 + $0x24] sm:$0xff]  }
   0x6   :  { %142 = vrot.lane.b32.xlu0 %v1408_v3, %s1509_s15  ;;  %116 = vrot.lane.b32.xlu1 %v1409_v4, %s1507_s9  ;;  %v1415_v12 = vld [vmem:[%s1839_s0 + $0x1c] sm:$0xff]   ;;  %v1429_v17 = vld [vmem:[%s1839_s0 + $0x10] sm:$0xff]  }
   0x7   :  { %v1421_v16 = vld [vmem:[%s1840_s1 + $0x18] sm:$0xff]   ;;  %1251 = vmatprep.mubr.msk.bf16.mxu0 %vm198_vm0, %v1429_v17  ;;  %v1422_v18 = vld [vmem:[%s1840_s1 + $0x20] sm:$0xff]   ;;  %v1423_v19 = vld [vmem:[%s1840_s1 + $0x28] sm:$0xff]  }
   0x8   :  { %335 = vmatpush1.bf16.msra.mxu0 %v1419_v11  ;;  %v1424_v20 = vld [vmem:[%s1840_s1 + $0x30] sm:$0xff]   ;;  %v1425_v21 = vld [vmem:[%s1840_s1 + $0x38] sm:$0xff]   ;;  %v1426_v22 = vld [vmem:[%s1840_s1 + $0x40] sm:$0xff]  }
   0x9   :  { %336 = vmatprep.subr.bf16.mxu0 %v1506_v1  ;;  %v1428_v23 = vld [vmem:[%s1840_s1 + $0x48] sm:$0xff]   ;;  %v1427_v25 = vld [vmem:[%s1839_s0] sm:$0xff]   ;;  %v1431_v30 = vld [vmem:[%s1839_s0 + $0x18] sm:$0xff]  }
   0xa   :  { %144 = vrot.lane.b32.xlu0 %v1410_v5, %s1509_s15  ;;  %172 = vrot.lane.b32.xlu1 %v1411_v6, %s1508_s12  ;;  %v1430_v29 = vld [vmem:[%s1839_s0 + $0x8] sm:$0xff]   ;;  %v1432_v38 = vld [vmem:[%s1839_s0 + $0x10] sm:$0xff]  }
   0xb   :  { %v1433_v39 = vld [vmem:[%s1839_s0 + $0x20] sm:$0xff]   ;;  %v1434_v46 = vld [vmem:[%s1839_s0 + $0x18] sm:$0xff]   ;;  %v1435_v47 = vld [vmem:[%s1839_s0 + $0x28] sm:$0xff]  }
   0xc   :  { %337 = vmatpush1.bf16.msra.mxu0 %v1420_v14  ;;  %v1436_v55 = vld [vmem:[%s1841_s3] sm:$0xff]   ;;  %v1437_v56 = vld [vmem:[%s1841_s3 + $0x8] sm:$0xff]  }
   0xd   :  { %338 = vmatprep.subr.bf16.mxu0 %v1506_v1  ;;  %1316 = vmatprep.subr.bf16.mxu1 %v1436_v55  ;;  %v1695_v58 = vld [vmem:[%s1842_s4] sm:$0xff]   ;;  %v1705_v59 = vld [vmem:[%s1842_s4 + $0x8] sm:$0xff]  }
   0xe   :  { %118 = vrot.lane.b32.xlu0 %v1412_v7, %s1507_s9  ;;  %146 = vrot.lane.b32.xlu1 %v1413_v8, %s1509_s15  ;;  %v1240_v60 = vld [vmem:[%s1843_s2] ss:$0 sm:$0xff] }
   0xf   :  { %1317 = vmatpush3.bf16.msra.mxu1 %v1436_v55 }
  0x10   :  { %339 = vmatpush1.bf16.msra.mxu0 %v1421_v16  ;;  %1318 = vmatprep.subr.bf16.mxu1 %v1437_v56 }
  0x11   :  { %340 = vmatprep.subr.bf16.mxu0 %v1506_v1 }
  0x12   :  { %174 = vrot.lane.b32.xlu0 %v1414_v10, %s1508_s12  ;;  %120 = vrot.lane.b32.xlu1 %v1415_v12, %s1507_s9 }
  0x13   :  { %1319 = vmatpush3.bf16.msra.mxu1 %v1437_v56 }
  0x14   :  { %341 = vmatpush1.bf16.msra.mxu0 %v1422_v18  ;;  %1328 = vmatprep.subr.bf16.mxu1 %v1510_v57 }
  0x15   :  { %342 = vmatprep.subr.bf16.mxu0 %v1506_v1 }
  0x16   :  { %148 = vrot.lane.b32.xlu0 %v1416_v13, %s1509_s15  ;;  %176 = vrot.lane.b32.xlu1 %v1417_v15, %s1508_s12 }
  0x18   :  { %343 = vmatpush1.bf16.msra.mxu0 %v1423_v19 }
  0x19   :  { %344 = vmatprep.subr.bf16.mxu0 %v1506_v1 }
  0x1c   :  { %345 = vmatpush1.bf16.msra.mxu0 %v1424_v20 }
  0x1d   :  { %346 = vmatprep.subr.bf16.mxu0 %v1506_v1 }
  0x20   :  { %347 = vmatpush1.bf16.msra.mxu0 %v1425_v21 }
  0x21   :  { %348 = vmatprep.subr.bf16.mxu0 %v1506_v1 }
  0x24   :  { %349 = vmatpush1.bf16.msra.mxu0 %v1426_v22 }
  0x25   :  { %350 = vmatprep.subr.bf16.mxu0 %v1506_v1 }
  0x28   :  { %351 = vmatpush1.bf16.msra.mxu0 %v1428_v23 }
  0x29   :  { %1376 = vmatprep.subr.bf16.mxu0 %v1510_v57 }
  0x74   :  { %v115_v24 = vpop.permute.xlu0 %114  ;;  %v171_v26 = vpop.permute.xlu1 %170 }
  0x75   :  { %v201_v27 = vsel %vm198_vm0, %v1427_v25, %v115_v24 }
  0x78   :  { %v143_v28 = vpop.permute.xlu0 %142  ;;  %v117_v32 = vpop.permute.xlu1 %116 }
  0x79   :  { %v213_v31 = vsel %vm211_vm1, %v201_v27, %v143_v28  ;;  %v204_v34 = vsel %vm198_vm0, %v1430_v29, %v117_v32 }
  0x7a   :  { %v222_v33 = vsel %vm220_vm2, %v213_v31, %v171_v26 }
  0x7b   :  { %365 = vmatmul.mubr.bf16.vlgmr.msra.gmra.mrb[0].mxu0 %v222_v33 }
  0x7c   :  { %v145_v35 = vpop.permute.xlu0 %144  ;;  %1252 = vmatprep.mubr.msk.bf16.mxu0 %vm198_vm0, %v1431_v30  ;;  %v173_v37 = vpop.permute.xlu1 %172  ;;  %1377 = vmatpush3.bf16.msra.mxu0 %v1695_v58 }
  0x7d   :  { %v215_v36 = vsel %vm211_vm1, %v204_v34, %v145_v35  ;;  %1378 = vmatprep.subr.bf16.mxu0 %v1510_v57 }
  0x7e   :  { %v225_v41 = vsel %vm220_vm2, %v215_v36, %v173_v37 }
  0x80   :  { %v119_v40 = vpop.permute.xlu0 %118  ;;  %v147_v42 = vpop.permute.xlu1 %146  ;;  %1379 = vmatpush3.bf16.msra.mxu0 %v1705_v59 }
  0x81   :  { %v207_v43 = vsel %vm198_vm0, %v1432_v38, %v119_v40  ;;  %1392 = vmatprep.subr.bf16.mxu0 %v1510_v57 }
  0x82   :  { %v217_v44 = vsel %vm211_vm1, %v207_v43, %v147_v42  ;;  %v1255_v42 = vld [vmem:[%s1844_s5] ss:$0 sm:$0xff] }
  0x83   :  { %373 = vmatmul.mubr.bf16.gmra.mrb[4].mxu0 %v225_v41 }
  0x84   :  { %1253 = vmatprep.mubr.msk.bf16.mxu0 %vm198_vm0, %v1433_v39  ;;  %v175_v45 = vpop.permute.xlu0 %174  ;;  %v121_v48 = vpop.permute.xlu1 %120 }
  0x85   :  { %v228_v49 = vsel %vm220_vm2, %v217_v44, %v175_v45  ;;  %v210_v50 = vsel %vm198_vm0, %v1434_v46, %v121_v48 }
  0x88   :  { %v149_v51 = vpop.permute.xlu0 %148  ;;  %v177_v53 = vpop.permute.xlu1 %176 }
  0x89   :  { %v219_v52 = vsel %vm211_vm1, %v210_v50, %v149_v51 }
  0x8a   :  { %v231_v54 = vsel %vm220_vm2, %v219_v52, %v177_v53 }
  0x8b   :  { %381 = vmatmul.mubr.bf16.gmra.mrb[8].mxu0 %v228_v49 }
  0x8c   :  { %1254 = vmatprep.mubr.msk.bf16.mxu0 %vm198_vm0, %v1435_v47 }
  0x93   :  { %389 = vmatmul.mubr.bf16.gmra.mrb[12].mxu0 %v231_v54 }
  0x94   :  { %1380 = vmatprep.mubr.msk.bf16.mxu0 %vm1511_vm3, %v1510_v57 }
 0x14e   :  { %v366_v61 = vpop.f32.mrb[0].mxu0 }
 0x14f   :  { %v367_v62 = vadd.f32 %v1240_v60, %v366_v61  ;;  %v368_v63 = vpop.f32.mrb[1].mxu0 }
 0x150   :  { %v369_v0 = vpop.f32.mrb[2].mxu0 }
 0x151   :  { %v397_v2 = vmul.f32 0.01, %v367_v62  ;;  %v370_v3 = vadd.f32 %v1240_v60, %v369_v0  ;;  %v371_v4 = vpop.f32.mrb[3].mxu0 }
 0x153   :  { %v398_v5 = vmul.f32 0.01, %v370_v3  ;;  %v405_v6 = vmax.f32 %v367_v62, %v397_v2 }
 0x155   :  { %v406_v7 = vmax.f32 %v370_v3, %v398_v5 }
 0x156   :  { %v374_v8 = vpop.f32.mrb[4].mxu0 }
 0x157   :  { %v375_v9 = vadd.f32 %v1240_v60, %v374_v8  ;;  %v376_v10 = vpop.f32.mrb[5].mxu0  ;;  %v413_v11 = vpack.c.bf16 %v406_v7, %v405_v6 }
 0x158   :  { %v377_v12 = vpop.f32.mrb[6].mxu0 }
 0x159   :  { %v399_v13 = vmul.f32 0.01, %v375_v9  ;;  %v378_v14 = vadd.f32 %v1240_v60, %v377_v12  ;;  %v379_v15 = vpop.f32.mrb[7].mxu0  ;;  %1320 = vmatprep.mubr.msk.bf16.mxu1 %vm198_vm0, %v413_v11 }
 0x15b   :  { %v400_v16 = vmul.f32 0.01, %v378_v14  ;;  %v407_v17 = vmax.f32 %v375_v9, %v399_v13 }
 0x15d   :  { %v408_v18 = vmax.f32 %v378_v14, %v400_v16 }
 0x15e   :  { %v382_v19 = vpop.f32.mrb[8].mxu0 }
 0x15f   :  { %v414_v20 = vpack.c.bf16 %v408_v18, %v407_v17  ;;  %v383_v21 = vadd.f32 %v1240_v60, %v382_v19  ;;  %v384_v22 = vpop.f32.mrb[9].mxu0 }
 0x160   :  { %v385_v23 = vpop.f32.mrb[10].mxu0 }
 0x161   :  { %v401_v24 = vmul.f32 0.01, %v383_v21  ;;  %v386_v25 = vadd.f32 %v1240_v60, %v385_v23  ;;  %v387_v26 = vpop.f32.mrb[11].mxu0  ;;  %1321 = vmatmul.mubr.msk.bf16.vlgmr.msra.gmra.mrb[0].mxu1 %vm198_vm0, %v414_v20 }
 0x162   :  { %1329 = vmatpush3.bf16.msra.mxu1 %v1695_v58 }
 0x163   :  { %v402_v27 = vmul.f32 0.01, %v386_v25  ;;  %1330 = vmatprep.subr.bf16.mxu1 %v1510_v57  ;;  %v409_v28 = vmax.f32 %v383_v21, %v401_v24 }
 0x165   :  { %v410_v29 = vmax.f32 %v386_v25, %v402_v27 }
 0x166   :  { %v390_v30 = vpop.f32.mrb[12].mxu0  ;;  %1331 = vmatpush3.bf16.msra.mxu1 %v1705_v59 }
 0x167   :  { %v415_v31 = vpack.c.bf16 %v410_v29, %v409_v28  ;;  %v391_v32 = vadd.f32 %v1240_v60, %v390_v30  ;;  %v392_v33 = vpop.f32.mrb[13].mxu0  ;;  %1336 = vmatprep.subr.bf16.mxu1 %v1510_v57 }
 0x168   :  { %v393_v34 = vpop.f32.mrb[14].mxu0 }
 0x169   :  { %v403_v35 = vmul.f32 0.01, %v391_v32  ;;  %v394_v36 = vadd.f32 %v1240_v60, %v393_v34  ;;  %v395_v37 = vpop.f32.mrb[15].mxu0  ;;  %1324 = vmatprep.mubr.msk.bf16.mxu1 %vm198_vm0, %v415_v31 }
 0x16b   :  { %v404_v38 = vmul.f32 0.01, %v394_v36  ;;  %v411_v39 = vmax.f32 %v391_v32, %v403_v35 }
 0x16d   :  { %v412_v40 = vmax.f32 %v394_v36, %v404_v38 }
 0x16f   :  { %v416_v41 = vpack.c.bf16 %v412_v40, %v411_v39 }
 0x171   :  { %1325 = vmatmul.mubr.msk.bf16.gmra.mrb[4].mxu1 %vm198_vm0, %v416_v41 }
 0x172   :  { %1332 = vmatprep.mubr.msk.bf16.mxu1 %vm1511_vm3, %v1510_v57 }
 0x179   :  { %1333 = vmatmul.mubr.bf16.vlgmr.msra.gmra.mrb[8].mxu1 %v1506_v1 }
 0x17a   :  { %1337 = vmatpush3.bf16.msra.mxu1 %v1695_v58  ;;  %1340 = vmatprep.mubr.msk.bf16.mxu1 %vm1511_vm3, %v1510_v57 }
 0x17b   :  { %1338 = vmatprep.subr.bf16.mxu1 %v1510_v57 }
 0x17e   :  { %1339 = vmatpush3.bf16.msra.mxu1 %v1705_v59 }
 0x17f   :  { %1344 = vmatprep.subr.bf16.mxu1 %v1510_v57 }
 0x234   :  { %v1322_v43 = vpop.f32.mrb[0].mxu1 }
 0x235   :  { %v1732_v44 = vadd.f32 %v1322_v43, %v1255_v42  ;;  %v486_v45 = vpop.f32.mrb[1].mxu1 }
 0x236   :  { %v1323_v1 = vpop.f32.mrb[2].mxu1  ;;  %v487_v60 = vadd.f32 %v1255_v42, %v486_v45 }
 0x237   :  { %v1734_v46 = vadd.f32 %v1323_v1, %v1255_v42  ;;  %v489_v47 = vpop.f32.mrb[3].mxu1 }
 0x238   :  { %v490_v48 = vadd.f32 %v1255_v42, %v489_v47 }
 0x244   :  { %v1326_v49 = vpop.f32.mrb[4].mxu1 }
 0x245   :  { %v1736_v50 = vadd.f32 %v1326_v49, %v1255_v42  ;;  %v502_v51 = vpop.f32.mrb[5].mxu1 }
 0x246   :  { %v1738_v52 = vadd.f32 %v1255_v42, %v502_v51  ;;  %v1327_v53 = vpop.f32.mrb[6].mxu1 }
 0x247   :  { %v1740_v54 = vadd.f32 %v1327_v53, %v1255_v42  ;;  %v505_v55 = vpop.f32.mrb[7].mxu1 }
 0x248   :  { %v1742_v56 = vadd.f32 %v1255_v42, %v505_v55 }
 0x24c   :  { %v570_v61 = vpop.f32.mrb[8].mxu1 }
 0x24d   :  { %v576_v62 = vadd.f32 %v570_v61, %v487_v60  ;;  %v1334_v63 = vpop.f32.mrb[9].mxu1 }
 0x24e   :  { %v573_v0 = vpop.f32.mrb[10].mxu1 }
 0x24f   :  { %1442 = vtanh.f32 %v576_v62  ;;  %v1335_v2 = vpop.f32.mrb[11].mxu1  ;;  %v1264_v4 = vmul.f32 -1.442695, %v576_v62 }
 0x251   :  { %1444 = vpow2.f32 %v1264_v4 }
 0x259   :  { %v1443_v3 = vpop.eup %1442 }
 0x25a   :  { %586 = vrot.lane.b32.xlu0 %v1443_v3, %s1507_s9 }
 0x25b   :  { %v1445_v5 = vpop.eup %1444 }
 0x25c   :  { %v580_v6 = vadd.f32 1.0, %v1445_v5 }
 0x25e   :  { %1446 = vrcp.f32 %v580_v6 }
 0x268   :  { %v1447_v7 = vpop.eup %1446 }
 0x269   :  { %v584_v10 = vmul.f32 0.0, %v1447_v7 }
 0x2cc   :  { %v587_v8 = vpop.permute.xlu0 %586 }
 0x2cd   :  { %v589_v9 = vmul.f32 %v1447_v7, %v587_v8 }
 0x2cf   :  { %591 = vrot.lane.b32.xlu1 %v589_v9, %s1507_s9 }
 0x341   :  { %v592_v11 = vpop.permute.xlu1 %591 }
 0x342   :  { %v594_v12 = vadd.f32 %v592_v11, %v584_v10 }
 0x344   :  { %1448 = vtanh.f32 %v594_v12 }
 0x34e   :  { %v1449_v13 = vpop.eup %1448 }
 0x34f   :  { %597 = vrot.lane.b32.xlu0 %v1449_v13, %s1507_s9 }
 0x3c1   :  { %v598_v14 = vpop.permute.xlu0 %597 }
 0x3c2   :  { %v1747_v15 = vmul.f32 %v1447_v7, %v598_v14 }
 0x3c4   :  { %v602_v16 = vpack.c.bf16 %v1747_v15, %v1747_v15 }
 0x3c6   :  { %604 = vrot.lane.b32.xlu1 %v602_v16, %s1509_s15 }
 0x438   :  { %v605_v17 = vpop.permute.xlu1 %604 }
 0x439   :  { %1341 = vmatmul.mubr.msk.bf16.vlgmr.msra.gmra.mrb[12].mxu1 %vm198_vm0, %v605_v17 }
 0x43a   :  { %1345 = vmatpush3.bf16.msra.mxu1 %v1695_v58  ;;  %1348 = vmatprep.mubr.msk.bf16.mxu1 %vm1511_vm3, %v1510_v57 }
 0x43b   :  { %1346 = vmatprep.subr.bf16.mxu1 %v1510_v57 }
 0x43e   :  { %1347 = vmatpush3.bf16.msra.mxu1 %v1705_v59 }
 0x43f   :  { %1352 = vmatprep.subr.bf16.mxu1 %v1510_v57 }
 0x50c   :  { %v643_v18 = vpop.f32.mrb[12].mxu1 }
 0x50d   :  { %v649_v19 = vadd.f32 %v643_v18, %v490_v48  ;;  %v1342_v20 = vpop.f32.mrb[13].mxu1 }
 0x50e   :  { %v646_v21 = vpop.f32.mrb[14].mxu1 }
 0x50f   :  { %1450 = vtanh.f32 %v649_v19  ;;  %v1343_v22 = vpop.f32.mrb[15].mxu1  ;;  %v1266_v24 = vmul.f32 -1.442695, %v649_v19 }
 0x511   :  { %1452 = vpow2.f32 %v1266_v24 }
 0x519   :  { %v1451_v23 = vpop.eup %1450 }
 0x51a   :  { %659 = vrot.lane.b32.xlu0 %v1451_v23, %s1507_s9 }
 0x51b   :  { %v1453_v25 = vpop.eup %1452 }
 0x51c   :  { %v653_v26 = vadd.f32 1.0, %v1453_v25 }
 0x51e   :  { %1454 = vrcp.f32 %v653_v26 }
 0x528   :  { %v1455_v27 = vpop.eup %1454 }
 0x529   :  { %v657_v30 = vmul.f32 %v1455_v27, %v594_v12 }
 0x58c   :  { %v660_v28 = vpop.permute.xlu0 %659 }
 0x58d   :  { %v662_v29 = vmul.f32 %v1455_v27, %v660_v28 }
 0x58f   :  { %664 = vrot.lane.b32.xlu1 %v662_v29, %s1507_s9 }
 0x601   :  { %v665_v31 = vpop.permute.xlu1 %664 }
 0x602   :  { %v667_v32 = vadd.f32 %v665_v31, %v657_v30 }
 0x604   :  { %1456 = vtanh.f32 %v667_v32 }
 0x60e   :  { %v1457_v33 = vpop.eup %1456 }
 0x60f   :  { %670 = vrot.lane.b32.xlu0 %v1457_v33, %s1507_s9 }
 0x681   :  { %v671_v34 = vpop.permute.xlu0 %670 }
 0x682   :  { %v673_v35 = vmul.f32 %v1455_v27, %v671_v34 }
 0x684   :  { %v675_v36 = vpack.c.bf16 %v673_v35, %v673_v35  ;;  %v674_v62 = vadd.f32 %v673_v35, %v1747_v15 }
 0x686   :  { %677 = vrot.lane.b32.xlu1 %v675_v36, %s1509_s15 }
 0x6f8   :  { %v678_v37 = vpop.permute.xlu1 %677 }
 0x6f9   :  { %1349 = vmatmul.mubr.msk.bf16.vlgmr.msra.gmra.mrb[16].mxu1 %vm198_vm0, %v678_v37 }
 0x6fa   :  { %1353 = vmatpush3.bf16.msra.mxu1 %v1695_v58  ;;  %1356 = vmatprep.mubr.msk.bf16.mxu1 %vm1511_vm3, %v1510_v57 }
 0x6fb   :  { %1354 = vmatprep.subr.bf16.mxu1 %v1510_v57 }
 0x6fe   :  { %1355 = vmatpush3.bf16.msra.mxu1 %v1705_v59 }
 0x6ff   :  { %1360 = vmatprep.subr.bf16.mxu1 %v1510_v57 }
 0x7cc   :  { %v716_v38 = vpop.f32.mrb[16].mxu1 }
 0x7cd   :  { %v722_v39 = vadd.f32 %v716_v38, %v1732_v44  ;;  %v1350_v40 = vpop.f32.mrb[17].mxu1 }
 0x7ce   :  { %v719_v41 = vpop.f32.mrb[18].mxu1 }
 0x7cf   :  { %1458 = vtanh.f32 %v722_v39  ;;  %v1351_v42 = vpop.f32.mrb[19].mxu1  ;;  %v1268_v45 = vmul.f32 -1.442695, %v722_v39 }
 0x7d1   :  { %1460 = vpow2.f32 %v1268_v45 }
 0x7d9   :  { %v1459_v43 = vpop.eup %1458 }
 0x7da   :  { %732 = vrot.lane.b32.xlu0 %v1459_v43, %s1507_s9 }
 0x7db   :  { %v1461_v1 = vpop.eup %1460 }
 0x7dc   :  { %v726_v47 = vadd.f32 1.0, %v1461_v1 }
 0x7de   :  { %1462 = vrcp.f32 %v726_v47 }
 0x7e8   :  { %v1463_v48 = vpop.eup %1462 }
 0x7e9   :  { %v730_v53 = vmul.f32 %v1463_v48, %v667_v32 }
 0x84c   :  { %v733_v49 = vpop.permute.xlu0 %732 }
 0x84d   :  { %v735_v51 = vmul.f32 %v1463_v48, %v733_v49 }
 0x84f   :  { %737 = vrot.lane.b32.xlu1 %v735_v51, %s1507_s9 }
 0x8c1   :  { %v738_v55 = vpop.permute.xlu1 %737 }
 0x8c2   :  { %v740_v44 = vadd.f32 %v738_v55, %v730_v53 }
 0x8c4   :  { %1464 = vtanh.f32 %v740_v44 }
 0x8ce   :  { %v1465_v60 = vpop.eup %1464 }
 0x8cf   :  { %743 = vrot.lane.b32.xlu0 %v1465_v60, %s1507_s9 }
 0x941   :  { %v744_v61 = vpop.permute.xlu0 %743 }
 0x942   :  { %v746_v63 = vmul.f32 %v1463_v48, %v744_v61 }
 0x944   :  { %v747_v0 = vadd.f32 %v746_v63, %v674_v62  ;;  %v748_v2 = vpack.c.bf16 %v746_v63, %v746_v63 }
 0x946   :  { %750 = vrot.lane.b32.xlu1 %v748_v2, %s1509_s15 }
 0x9b8   :  { %v751_v3 = vpop.permute.xlu1 %750 }
 0x9b9   :  { %1357 = vmatmul.mubr.msk.bf16.vlgmr.msra.gmra.mrb[20].mxu1 %vm198_vm0, %v751_v3 }
 0x9ba   :  { %1361 = vmatpush3.bf16.msra.mxu1 %v1695_v58  ;;  %1364 = vmatprep.mubr.msk.bf16.mxu1 %vm1511_vm3, %v1510_v57 }
 0x9bb   :  { %1362 = vmatprep.subr.bf16.mxu1 %v1510_v57 }
 0x9be   :  { %1363 = vmatpush3.bf16.msra.mxu1 %v1705_v59 }
 0x9bf   :  { %1368 = vmatprep.subr.bf16.mxu1 %v1510_v57 }
 0xa8c   :  { %v789_v4 = vpop.f32.mrb[20].mxu1 }
 0xa8d   :  { %v795_v5 = vadd.f32 %v789_v4, %v1734_v46  ;;  %v1358_v6 = vpop.f32.mrb[21].mxu1 }
 0xa8e   :  { %v792_v7 = vpop.f32.mrb[22].mxu1 }
 0xa8f   :  { %1466 = vtanh.f32 %v795_v5  ;;  %v1359_v8 = vpop.f32.mrb[23].mxu1  ;;  %v1270_v10 = vmul.f32 -1.442695, %v795_v5 }
 0xa91   :  { %1468 = vpow2.f32 %v1270_v10 }
 0xa99   :  { %v1467_v9 = vpop.eup %1466 }
 0xa9a   :  { %805 = vrot.lane.b32.xlu0 %v1467_v9, %s1507_s9 }
 0xa9b   :  { %v1469_v11 = vpop.eup %1468 }
 0xa9c   :  { %v799_v12 = vadd.f32 1.0, %v1469_v11 }
 0xa9e   :  { %1470 = vrcp.f32 %v799_v12 }
 0xaa8   :  { %v1471_v13 = vpop.eup %1470 }
 0xaa9   :  { %v803_v16 = vmul.f32 %v1471_v13, %v740_v44 }
 0xb0c   :  { %v806_v14 = vpop.permute.xlu0 %805 }
 0xb0d   :  { %v808_v15 = vmul.f32 %v1471_v13, %v806_v14 }
 0xb0f   :  { %810 = vrot.lane.b32.xlu1 %v808_v15, %s1507_s9 }
 0xb81   :  { %v811_v17 = vpop.permute.xlu1 %810 }
 0xb82   :  { %v813_v46 = vadd.f32 %v811_v17, %v803_v16 }
 0xb84   :  { %1472 = vtanh.f32 %v813_v46 }
 0xb8e   :  { %v1473_v18 = vpop.eup %1472 }
 0xb8f   :  { %816 = vrot.lane.b32.xlu0 %v1473_v18, %s1507_s9 }
 0xc01   :  { %v817_v19 = vpop.permute.xlu0 %816 }
 0xc02   :  { %v819_v20 = vmul.f32 %v1471_v13, %v817_v19 }
 0xc04   :  { %v820_v21 = vadd.f32 %v819_v20, %v747_v0  ;;  %v821_v22 = vpack.c.bf16 %v819_v20, %v819_v20 }
 0xc06   :  { %823 = vrot.lane.b32.xlu1 %v821_v22, %s1509_s15 }
 0xc78   :  { %v824_v23 = vpop.permute.xlu1 %823 }
 0xc79   :  { %1365 = vmatmul.mubr.msk.bf16.vlgmr.msra.gmra.mrb[24].mxu1 %vm198_vm0, %v824_v23 }
 0xc7a   :  { %1369 = vmatpush3.bf16.msra.mxu1 %v1695_v58  ;;  %1372 = vmatprep.mubr.msk.bf16.mxu1 %vm1511_vm3, %v1510_v57 }
 0xc7b   :  { %1370 = vmatprep.subr.bf16.mxu1 %v1510_v57 }
 0xc7e   :  { %1371 = vmatpush3.bf16.msra.mxu1 %v1705_v59 }
 0xc7f   :  { %1384 = vmatprep.subr.bf16.mxu1 %v1510_v57 }
 0xd4c   :  { %v862_v24 = vpop.f32.mrb[24].mxu1 }
 0xd4d   :  { %v868_v25 = vadd.f32 %v862_v24, %v1738_v52  ;;  %v1366_v26 = vpop.f32.mrb[25].mxu1 }
 0xd4e   :  { %v865_v27 = vpop.f32.mrb[26].mxu1 }
 0xd4f   :  { %1474 = vtanh.f32 %v868_v25  ;;  %v1367_v28 = vpop.f32.mrb[27].mxu1  ;;  %v1272_v30 = vmul.f32 -1.442695, %v868_v25 }
 0xd51   :  { %1476 = vpow2.f32 %v1272_v30 }
 0xd59   :  { %v1475_v29 = vpop.eup %1474 }
 0xd5a   :  { %878 = vrot.lane.b32.xlu0 %v1475_v29, %s1507_s9 }
 0xd5b   :  { %v1477_v31 = vpop.eup %1476 }
 0xd5c   :  { %v872_v32 = vadd.f32 1.0, %v1477_v31 }
 0xd5e   :  { %1478 = vrcp.f32 %v872_v32 }
 0xd68   :  { %v1479_v33 = vpop.eup %1478 }
 0xd69   :  { %v876_v36 = vmul.f32 %v1479_v33, %v813_v46 }
 0xdcc   :  { %v879_v34 = vpop.permute.xlu0 %878 }
 0xdcd   :  { %v881_v35 = vmul.f32 %v1479_v33, %v879_v34 }
 0xdcf   :  { %883 = vrot.lane.b32.xlu1 %v881_v35, %s1507_s9 }
 0xe41   :  { %v884_v37 = vpop.permute.xlu1 %883 }
 0xe42   :  { %v886_v52 = vadd.f32 %v884_v37, %v876_v36 }
 0xe44   :  { %1480 = vtanh.f32 %v886_v52 }
 0xe4e   :  { %v1481_v38 = vpop.eup %1480 }
 0xe4f   :  { %889 = vrot.lane.b32.xlu0 %v1481_v38, %s1507_s9  ;;  %v1440_v38 = vld [vmem:[%s1845_s6] sm:$0xff]  }
 0xec1   :  { %v890_v39 = vpop.permute.xlu0 %889 }
 0xec2   :  { %v892_v40 = vmul.f32 %v1479_v33, %v890_v39  ;;  %v1441_v39 = vld [vmem:[%s1845_s6 + $0x8] sm:$0xff]  }
 0xec4   :  { %v893_v41 = vadd.f32 %v892_v40, %v820_v21  ;;  %v894_v42 = vpack.c.bf16 %v892_v40, %v892_v40 }
 0xec6   :  { %896 = vrot.lane.b32.xlu1 %v894_v42, %s1509_s15 }
 0xf38   :  { %v897_v43 = vpop.permute.xlu1 %896 }
 0xf39   :  { %1373 = vmatmul.mubr.msk.bf16.vlgmr.msra.gmra.mrb[28].mxu1 %vm198_vm0, %v897_v43 }
 0xf3a   :  { %1385 = vmatpush3.bf16.msra.mxu1 %v1695_v58  ;;  %1388 = vmatprep.mubr.msk.bf16.mxu1 %vm1511_vm3, %v1510_v57 }
 0xf3b   :  { %1386 = vmatprep.subr.bf16.mxu1 %v1510_v57 }
 0xf3e   :  { %1387 = vmatpush3.bf16.msra.mxu1 %v1705_v59 }
0x100c   :  { %v935_v45 = vpop.f32.mrb[28].mxu1 }
0x100d   :  { %v941_v1 = vadd.f32 %v935_v45, %v1742_v56  ;;  %v1374_v47 = vpop.f32.mrb[29].mxu1 }
0x100e   :  { %v938_v48 = vpop.f32.mrb[30].mxu1  ;;  %v1279_v47 = vld [vmem:[%s1846_s7] ss:$0 sm:$0xff] }
0x100f   :  { %1482 = vtanh.f32 %v941_v1  ;;  %v1375_v49 = vpop.f32.mrb[31].mxu1  ;;  %v1274_v53 = vmul.f32 -1.442695, %v941_v1 }
0x1011   :  { %1484 = vpow2.f32 %v1274_v53 }
0x1019   :  { %v1483_v51 = vpop.eup %1482 }
0x101a   :  { %951 = vrot.lane.b32.xlu0 %v1483_v51, %s1507_s9 }
0x101b   :  { %v1485_v58 = vpop.eup %1484 }
0x101c   :  { %v945_v55 = vadd.f32 1.0, %v1485_v58 }
0x101e   :  { %1486 = vrcp.f32 %v945_v55 }
0x1028   :  { %v1487_v44 = vpop.eup %1486 }
0x1029   :  { %v949_v59 = vmul.f32 %v1487_v44, %v886_v52 }
0x108c   :  { %v952_v60 = vpop.permute.xlu0 %951 }
0x108d   :  { %v954_v61 = vmul.f32 %v1487_v44, %v952_v60 }
0x108f   :  { %956 = vrot.lane.b32.xlu1 %v954_v61, %s1507_s9 }
0x1101   :  { %v957_v62 = vpop.permute.xlu1 %956 }
0x1102   :  { %v959_v56 = vadd.f32 %v957_v62, %v949_v59 }
0x1104   :  { %1488 = vtanh.f32 %v959_v56 }
0x110e   :  { %v1489_v63 = vpop.eup %1488 }
0x110f   :  { %962 = vrot.lane.b32.xlu0 %v1489_v63, %s1507_s9 }
0x1181   :  { %v963_v0 = vpop.permute.xlu0 %962 }
0x1182   :  { %v965_v2 = vmul.f32 %v1487_v44, %v963_v0 }
0x1184   :  { %v966_v3 = vadd.f32 %v965_v2, %v893_v41  ;;  %v967_v4 = vpack.c.bf16 %v965_v2, %v965_v2 }
0x1186   :  { %969 = vrot.lane.b32.xlu1 %v967_v4, %s1509_s15 }
0x11f8   :  { %v970_v5 = vpop.permute.xlu1 %969 }
0x11f9   :  { %1381 = vmatmul.mubr.msk.bf16.vlgmr.msra.gmra.mrb[16].mxu0 %vm198_vm0, %v970_v5 }
0x11fa   :  { %1396 = vmatprep.mubr.msk.bf16.mxu0 %vm1511_vm3, %v1510_v57  ;;  %1393 = vmatpush3.bf16.msra.mxu0 %v1440_v38 }
0x11fb   :  { %1394 = vmatprep.subr.bf16.mxu0 %v1510_v57 }
0x11fe   :  { %1395 = vmatpush3.bf16.msra.mxu0 %v1441_v39 }
0x12cc   :  { %v1008_v6 = vpop.f32.mrb[16].mxu0 }
0x12cd   :  { %v1014_v7 = vadd.f32 %v1008_v6, %v1736_v50  ;;  %v1382_v8 = vpop.f32.mrb[17].mxu0 }
0x12ce   :  { %v1011_v9 = vpop.f32.mrb[18].mxu0 }
0x12cf   :  { %1490 = vtanh.f32 %v1014_v7  ;;  %v1383_v10 = vpop.f32.mrb[19].mxu0  ;;  %v1276_v12 = vmul.f32 -1.442695, %v1014_v7 }
0x12d1   :  { %1492 = vpow2.f32 %v1276_v12 }
0x12d9   :  { %v1491_v11 = vpop.eup %1490 }
0x12da   :  { %1024 = vrot.lane.b32.xlu0 %v1491_v11, %s1507_s9 }
0x12db   :  { %v1493_v13 = vpop.eup %1492 }
0x12dc   :  { %v1018_v14 = vadd.f32 1.0, %v1493_v13 }
0x12de   :  { %1494 = vrcp.f32 %v1018_v14 }
0x12e8   :  { %v1495_v15 = vpop.eup %1494 }
0x12e9   :  { %v1022_v46 = vmul.f32 %v1495_v15, %v959_v56 }
0x134c   :  { %v1025_v16 = vpop.permute.xlu0 %1024 }
0x134d   :  { %v1027_v17 = vmul.f32 %v1495_v15, %v1025_v16 }
0x134f   :  { %1029 = vrot.lane.b32.xlu1 %v1027_v17, %s1507_s9 }
0x13c1   :  { %v1030_v18 = vpop.permute.xlu1 %1029 }
0x13c2   :  { %v1032_v50 = vadd.f32 %v1030_v18, %v1022_v46 }
0x13c4   :  { %1496 = vtanh.f32 %v1032_v50 }
0x13ce   :  { %v1497_v19 = vpop.eup %1496 }
0x13cf   :  { %1035 = vrot.lane.b32.xlu0 %v1497_v19, %s1507_s9 }
0x1441   :  { %v1036_v20 = vpop.permute.xlu0 %1035 }
0x1442   :  { %v1038_v21 = vmul.f32 %v1495_v15, %v1036_v20 }
0x1444   :  { %v1039_v22 = vadd.f32 %v1038_v21, %v966_v3  ;;  %v1040_v23 = vpack.c.bf16 %v1038_v21, %v1038_v21 }
0x1446   :  { %1042 = vrot.lane.b32.xlu1 %v1040_v23, %s1509_s15 }
0x14b8   :  { %v1043_v24 = vpop.permute.xlu1 %1042 }
0x14b9   :  { %1389 = vmatmul.mubr.msk.bf16.vlgmr.msra.gmra.mrb[32].mxu1 %vm198_vm0, %v1043_v24 }
0x158c   :  { %v1081_v25 = vpop.f32.mrb[32].mxu1 }
0x158d   :  { %v1087_v26 = vadd.f32 %v1081_v25, %v1740_v54  ;;  %v1390_v27 = vpop.f32.mrb[33].mxu1 }
0x158e   :  { %v1084_v28 = vpop.f32.mrb[34].mxu1 }
0x158f   :  { %1498 = vtanh.f32 %v1087_v26  ;;  %v1391_v29 = vpop.f32.mrb[35].mxu1  ;;  %v1278_v31 = vmul.f32 -1.442695, %v1087_v26 }
0x1591   :  { %1500 = vpow2.f32 %v1278_v31 }
0x1599   :  { %v1499_v30 = vpop.eup %1498 }
0x159a   :  { %1097 = vrot.lane.b32.xlu0 %v1499_v30, %s1507_s9 }
0x159b   :  { %v1501_v32 = vpop.eup %1500 }
0x159c   :  { %v1091_v33 = vadd.f32 1.0, %v1501_v32 }
0x159e   :  { %1502 = vrcp.f32 %v1091_v33 }
0x15a8   :  { %v1503_v34 = vpop.eup %1502 }
0x15a9   :  { %v1095_v37 = vmul.f32 %v1503_v34, %v1032_v50 }
0x160c   :  { %v1098_v35 = vpop.permute.xlu0 %1097 }
0x160d   :  { %v1100_v36 = vmul.f32 %v1503_v34, %v1098_v35 }
0x160f   :  { %1102 = vrot.lane.b32.xlu1 %v1100_v36, %s1507_s9 }
0x1681   :  { %v1103_v52 = vpop.permute.xlu1 %1102 }
0x1682   :  { %v1105_v54 = vadd.f32 %v1103_v52, %v1095_v37 }
0x1684   :  { %1504 = vtanh.f32 %v1105_v54 }
0x168e   :  { %v1505_v40 = vpop.eup %1504 }
0x168f   :  { %1108 = vrot.lane.b32.xlu0 %v1505_v40, %s1507_s9 }
0x1701   :  { %v1109_v41 = vpop.permute.xlu0 %1108 }
0x1702   :  { %v1111_v42 = vmul.f32 %v1503_v34, %v1109_v41 }
0x1704   :  { %v1112_v43 = vadd.f32 %v1111_v42, %v1039_v22 }
0x1706   :  { %v1113_v45 = vpack.c.bf16 %v1112_v43, %v1112_v43 }
0x1708   :  { %1126 = vrot.lane.b32.xlu1 %v1113_v45, %s1509_s15 }
0x177a   :  { %v1127_v1 = vpop.permute.xlu1 %1126 }
0x177b   :  { %1397 = vmatmul.mubr.msk.bf16.vlgmr.msra.gmra.mrb[20].mxu0 %vm198_vm0, %v1127_v1 }
0x184e   :  { %v1177_v48 = vpop.f32.mrb[20].mxu0 }
0x184f   :  { %v1178_v49 = vadd.f32 %v1279_v47, %v1177_v48  ;;  %v1398_v57 = vpop.f32.mrb[21].mxu0 }
0x1850   :  { %v1180_v51 = vpop.f32.mrb[22].mxu0 }
0x1851   :  { %1183 = vst [vmem:[%s1847_s8] sm:$0xff] %v1178_v49  ;;  %v1399_v53 = vpop.f32.mrb[23].mxu0 }

</bundles_post_ra>
